<compile_context>
chip_gen: v7x
topology: tpu7x:2x2x1
jax: 0.10.0
libtpu: 0.0.40
codegen_flags: <defaults>
</compile_context>

<pallas_src>
import functools

import jax
import jax.numpy as jnp
from jax.experimental import pallas as pl
from jax.experimental.pallas import tpu as pltpu

ALPHA = 1.0        # self.alpha_ in the torch module
assert ALPHA == 1.0  # reciprocal shortcut below relies on exponent == -1

_HP = 128          # padded latent width: lane-dense z stores, 128-deep MXU pass


def _batch_axis_semantics():
    """CORE_PARALLEL on v7x (2 TC/chip) so each TensorCore takes batch elems;
    plain PARALLEL on single-TC v5e/v6e (measured ~no-op there)."""
    try:
        kind = jax.devices()[0].device_kind.lower()
    except Exception:  # pragma: no cover - defensive
        kind = ""
    if "v7" in kind or "7x" in kind:
        return pltpu.CORE_PARALLEL
    return pltpu.PARALLEL


# ---------------------------------------------------------------------------
# Stand-in for Full_SiT_model (external autoencoder): deterministic linear
# encoder/decoder implemented as a row-tiled Pallas MXU kernel.
# TODO(synk): the real SiT transformer autoencoder is external to ClusterNet; a
# deterministic linear encode/decode stand-in with the same (z, x_reconstr)
# shapes/roles is used here.
# ---------------------------------------------------------------------------
def _sit_kernel(x_ref, we_ref, wd_ref, z_ref, xr_ref):
    # MXU operands in bf16 (native width on v5e/v6e/v7x); accumulate in f32.
    xb = x_ref[...].astype(jnp.bfloat16)
    z = jnp.tanh(jnp.dot(xb, we_ref[...],
                         preferred_element_type=jnp.float32))   # f32 EUP tanh
    z_ref[...] = z                                              # lane-dense (Hp=128)
    xr_ref[...] = jnp.dot(z.astype(jnp.bfloat16), wd_ref[...],
                          preferred_element_type=jnp.float32)


def sit_forward(x, w_enc, w_dec, *, row_tile=512):
    """x:(B,T,Din) f32, w_enc:(Din,H), w_dec:(H,Din). Returns zero-padded
    latent z_pad:(B,T,Hp) and x_reconstr:(B,T,Din)."""
    B, T, Din = x.shape
    H = w_enc.shape[1]
    assert H <= _HP
    rows = B * T
    row_tile = min(row_tile, rows)
    assert rows % row_tile == 0, "row count must divide the row tile"

    # Zero-pad H -> Hp once in the wrapper (bf16 halves weight DMA bytes).
    # Padded columns of z come out exactly 0 (dot with zero cols, tanh(0)=0),
    # padded rows of w_dec are 0, so x_reconstr is unchanged.
    we_p = jnp.zeros((Din, _HP), jnp.bfloat16).at[:, :H].set(
        w_enc.astype(jnp.bfloat16))
    wd_p = jnp.zeros((_HP, Din), jnp.bfloat16).at[:H, :].set(
        w_dec.astype(jnp.bfloat16))

    x2 = x.reshape(rows, Din)

    # Explicit VMEM budget: double-buffered x/z/xr tiles + resident bf16
    # weights (+1 MiB slack), floored at 8 MiB, capped at 64 MiB (v7x-safe).
    # TODO(synk): at production SiT sizes, tile the Din/H contractions as an
    # "arbitrary" reduction grid axis with a VMEM f32 accumulator instead of
    # keeping full weights resident (v7x has only 64 MiB VMEM).
    vmem_need = 2 * (row_tile * (2 * Din + _HP) * 4
                     + (Din * _HP + _HP * Din) * 2) + (1 << 20)
    vmem_limit = int(min(max(vmem_need, 8 << 20), 64 << 20))

    z2, xr2 = pl.pallas_call(
        _sit_kernel,
        out_shape=(jax.ShapeDtypeStruct((rows, _HP), jnp.float32),
                   jax.ShapeDtypeStruct((rows, Din), jnp.float32)),
        grid=(rows // row_tile,),
        in_specs=[pl.BlockSpec((row_tile, Din), lambda i: (i, 0)),
                  pl.BlockSpec((Din, _HP), lambda i: (0, 0)),   # resident weights
                  pl.BlockSpec((_HP, Din), lambda i: (0, 0))],  # resident weights
        out_specs=(pl.BlockSpec((row_tile, _HP), lambda i: (i, 0)),
                   pl.BlockSpec((row_tile, Din), lambda i: (i, 0))),
        compiler_params=pltpu.CompilerParams(
            dimension_semantics=(pltpu.PARALLEL,),
            vmem_limit_bytes=vmem_limit),
    )(x2, we_p, wd_p)
    return z2.reshape(B, T, _HP), xr2.reshape(B, T, Din)


# ---------------------------------------------------------------------------
# Clustering head kernel, (K, T) orientation.  Per batch element:
#   sim[k,t] = ||z_t - c_k||                       (EUC similarity)
#   Q = 1/(1+sim)            (alpha=1)             final_Q = normalize over K
#   P = Q^2 / sum_T(Q)                             final_P = normalize over K
#   kl_row[t] = sum_K final_P * log(final_P/final_Q)
#   preds[t]  = argmax_K(final_Q) == argmin_K(sim)
# Consumes z in (T, Hp) layout (no wrapper transpose); one in-VMEM transpose.
# ---------------------------------------------------------------------------
def _cluster_head_kernel(z_ref, c_ref, pred_ref, klrow_ref):
    z = z_ref[0]                                   # (T, Hp) f32
    c = c_ref[0]                                   # (K, Hp) f32
    K = c.shape[0]
    T = z.shape[0]

    zt = z.T                                       # (Hp, T) — XLU transpose, in-VMEM
    # squared Euclidean distance via MXU matmul expansion (clamped >= 0);
    # padded latent columns are zero in both z and c, so distances are exact.
    cz = jnp.dot(c, zt, preferred_element_type=jnp.float32)       # (K, T)
    cc = jnp.sum(c * c, axis=1, keepdims=True)                    # (K, 1)
    zz = jnp.sum(zt * zt, axis=0, keepdims=True)                  # (1, T)
    d2 = jnp.maximum(cc + zz - 2.0 * cz, 0.0)
    sim = jnp.sqrt(d2)                                            # (K, T)

    # Student-t kernel: alpha=1 -> exponent is exactly -1 -> plain reciprocal.
    q = pl.reciprocal(1.0 + sim, approx=False)                    # (K, T)

    # Normalizers (small tiles, exact reciprocals since they feed the KL log).
    sum_q_k = jnp.sum(q, axis=0, keepdims=True)                   # (1, T)
    sum_q_t = jnp.sum(q, axis=1, keepdims=True)                   # (K, 1)
    r_qt = pl.reciprocal(sum_q_t, approx=False)                   # (K, 1)
    p = (q * q) * r_qt                                            # (K, T)
    sum_p_k = jnp.sum(p, axis=0, keepdims=True)                   # (1, T)
    r_pk = pl.reciprocal(sum_p_k, approx=False)                   # (1, T)
    final_p = p * r_pk

    # ratio = final_P/final_Q = q * (1/sum_T q) * (sum_K q) * (1/sum_K p):
    # reuses the already-computed reciprocals -> no (K,T)-wide reciprocal.
    ratio = (q * r_qt) * (sum_q_k * r_pk)
    # xlogy semantics: target == 0 terms contribute 0 (avoid 0 * log(0) NaN).
    kl_elem = jnp.where(final_p > 0.0, final_p * jnp.log(ratio), 0.0)
    klrow_ref[0] = jnp.sum(kl_elem, axis=0, keepdims=True)        # (1, T)

    # preds = argmax_K(final_Q) == argmin_K(sim); lowest index wins ties,
    # matching torch.max's first-max behavior.
    kidx = jax.lax.broadcasted_iota(jnp.int32, (K, T), 0)
    col_min = jnp.min(sim, axis=0, keepdims=True)
    pred_ref[0] = jnp.min(jnp.where(sim <= col_min, kidx, K),
                          axis=0, keepdims=True)                  # (1, T)


def cluster_head(z_pad, centroids):
    """z_pad: (B, T, Hp) latent (zero-padded past H); centroids: (B, K, Hp)."""
    B, T, Hp = z_pad.shape
    K = centroids.shape[1]
    # NOTE: on single-TC v5e/v6e the whole B=2 problem fits one block; the
    # extra grid step costs ~0.35 µs so the per-B split is kept for v7x.
    preds, kl_rows = pl.pallas_call(
        _cluster_head_kernel,
        out_shape=(
            jax.ShapeDtypeStruct((B, 1, T), jnp.int32),    # preds (lane-dense)
            jax.ShapeDtypeStruct((B, 1, T), jnp.float32),  # KL partial sums
        ),
        grid=(B,),
        in_specs=[pl.BlockSpec((1, T, Hp), lambda b: (b, 0, 0)),
                  pl.BlockSpec((1, K, Hp), lambda b: (b, 0, 0))],
        out_specs=(pl.BlockSpec((1, 1, T), lambda b: (b, 0, 0)),
                   pl.BlockSpec((1, 1, T), lambda b: (b, 0, 0))),
        compiler_params=pltpu.CompilerParams(
            dimension_semantics=(_batch_axis_semantics(),)),
    )(z_pad, centroids)
    return preds, kl_rows


# ---------------------------------------------------------------------------
# Glue that mirrors the torch forward's non-kernel pieces.
# ---------------------------------------------------------------------------
def kmeans_centroids(z, k, iters=10):
    # TODO(synk): sklearn KMeans (k-means++ init, n_init restarts) has no clean
    # Pallas equivalent; deterministic Lloyd iterations (first-k init) in plain
    # JAX produce the per-cluster mean centroids the torch code builds.
    z2 = jnp.sum(z * z, axis=1, keepdims=True)                    # (T, 1)

    def assign(c):
        # matmul expansion ||z||^2 + ||c||^2 - 2 z@c.T (MXU; no (T,K,H) temp)
        c2 = jnp.sum(c * c, axis=1)[None, :]                      # (1, K)
        d2 = z2 + c2 - 2.0 * (z @ c.T)                            # (T, K)
        return jnp.argmin(d2, axis=1)

    def update(c, labels):
        onehot = jax.nn.one_hot(labels, k, dtype=z.dtype)         # (T, K)
        counts = jnp.sum(onehot, axis=0)                          # (K,)
        sums = onehot.T @ z                                       # (K, H)
        return jnp.where(counts[:, None] > 0,
                         sums / jnp.maximum(counts, 1.0)[:, None], c)

    def step(c, _):
        return update(c, assign(c)), None

    c, _ = jax.lax.scan(step, z[:k], None, length=iters)
    labels = assign(c)
    # mimic torch loop: centroids_[cluster] = z[labels == cluster].mean(0)
    return update(c, labels)


def adjusted_rand_index(pred, label, k_pred, k_label):
    # sklearn.metrics.adjusted_rand_score from the contingency table.
    cont = (jax.nn.one_hot(pred, k_pred, dtype=jnp.float32).T
            @ jax.nn.one_hot(label, k_label, dtype=jnp.float32))
    comb2 = lambda x: x * (x - 1.0) * 0.5
    sum_comb = jnp.sum(comb2(cont))
    sum_a = jnp.sum(comb2(jnp.sum(cont, axis=1)))
    sum_b = jnp.sum(comb2(jnp.sum(cont, axis=0)))
    total = comb2(jnp.asarray(pred.shape[0], jnp.float32))
    expected = sum_a * sum_b / total
    max_index = 0.5 * (sum_a + sum_b)
    denom = max_index - expected
    return jnp.where(jnp.abs(denom) < 1e-12, 1.0,
                     (sum_comb - expected) / denom)


@functools.partial(jax.jit, static_argnums=(4,))
def clusternet_forward(x, all_gt, w_enc, w_dec, n_clusters):
    B, T, _ = x.shape
    H = w_enc.shape[1]
    z_pad, x_reconstr = sit_forward(x, w_enc, w_dec)              # z_pad (B,T,Hp)
    # k-means on the padded latent: padded cols are exactly 0 in z and hence in
    # every centroid mean, so assignments / distances match the H-wide problem.
    centroids = jax.vmap(lambda zi: kmeans_centroids(zi, n_clusters))(z_pad)
    preds, kl_rows = cluster_head(z_pad, centroids)
    # LOSS_KL = (sum_b [sum_{t,k} P log(P/Q)] / T) / B  (KLDivLoss 'batchmean')
    loss_kl = jnp.sum(kl_rows) / (T * B)
    pred_label = all_gt[0][0]                                     # as in torch
    aris = jax.vmap(
        lambda p: adjusted_rand_index(p, pred_label, n_clusters, n_clusters)
    )(preds[:, 0, :])
    all_batch_ari = jnp.sum(aris) / B
    z = z_pad[..., :H]                                            # unpad to centr_size
    return z, x_reconstr, loss_kl, all_batch_ari


if __name__ == "__main__":
    # H = centr_size = 64 (fixed by the module), K = n_clusters.
    # Din chosen as 128 so the reconstruction output is lane-dense.
    B, T, Din, H, K = 2, 128, 128, 64, 4
    key = jax.random.PRNGKey(0)
    kx, ke, kd, kg = jax.random.split(key, 4)
    x = jax.random.normal(kx, (B, T, Din), dtype=jnp.float32)
    w_enc = jax.random.normal(ke, (Din, H), dtype=jnp.float32) * 0.1
    w_dec = jax.random.normal(kd, (H, Din), dtype=jnp.float32) * 0.1
    all_gt = jax.random.randint(kg, (1, 1, T), 0, K, dtype=jnp.int32)

    z, x_rec, loss_kl, ari = clusternet_forward(x, all_gt, w_enc, w_dec, K)
    jax.block_until_ready((z, x_rec, loss_kl, ari))
    print("KERNEL_OK")
</pallas_src>

<mosaic_0001>
module attributes {stable_mosaic.version = 11 : i64} {
  func.func @_sit_kernel(%arg0: i32, %arg1: memref<256x128xf32, #tpu.memory_space<vmem>>, %arg2: memref<128x128xbf16, #tpu.memory_space<vmem>>, %arg3: memref<128x128xbf16, #tpu.memory_space<vmem>>, %arg4: memref<256x128xf32, #tpu.memory_space<vmem>>, %arg5: memref<256x128xf32, #tpu.memory_space<vmem>>) attributes {dimension_semantics = [#tpu.dimension_semantics<parallel>], iteration_bounds = array<i64: 1>, scalar_prefetch = 0 : i64, scratch_operands = 0 : i64, tpu.core_type = #tpu.core_type<tc>, window_params = [{transform_indices = @transform_0, window_bounds = array<i64: 256, 128>}, {pipeline_mode = #tpu.pipeline_mode<synchronous>, transform_indices = @transform_1, window_bounds = array<i64: 128, 128>}, {pipeline_mode = #tpu.pipeline_mode<synchronous>, transform_indices = @transform_2, window_bounds = array<i64: 128, 128>}, {transform_indices = @transform_3, window_bounds = array<i64: 256, 128>}, {transform_indices = @transform_4, window_bounds = array<i64: 256, 128>}]} {
    %c0 = arith.constant 0 : index
    %c0_0 = arith.constant 0 : index
    %0 = vector.load %arg1[%c0, %c0_0] : memref<256x128xf32, #tpu.memory_space<vmem>>, vector<256x128xf32>
    %1 = arith.truncf %0 : vector<256x128xf32> to vector<256x128xbf16>
    %c0_1 = arith.constant 0 : index
    %c0_2 = arith.constant 0 : index
    %2 = vector.load %arg2[%c0_1, %c0_2] : memref<128x128xbf16, #tpu.memory_space<vmem>>, vector<128x128xbf16>
    %cst = arith.constant dense<0.000000e+00> : vector<256x128xf32>
    %3 = tpu.matmul %1, %2, %cst {dimension_numbers = #tpu.dot_dimension_numbers<[1], [0], [0], [1], [0, 0, 1, 1], [], []>} : vector<256x128xbf16>, vector<128x128xbf16>, vector<256x128xf32> -> vector<256x128xf32>
    %4 = math.tanh %3 : vector<256x128xf32>
    %c0_3 = arith.constant 0 : index
    %c0_4 = arith.constant 0 : index
    %5 = vector.load %arg4[%c0_3, %c0_4] : memref<256x128xf32, #tpu.memory_space<vmem>>, vector<256x128xf32>
    tpu.vector_store %arg4[%c0_3, %c0_4], %4 {strides = array<i32>} : memref<256x128xf32, #tpu.memory_space<vmem>>, vector<256x128xf32>,
    %6 = arith.truncf %4 : vector<256x128xf32> to vector<256x128xbf16>
    %c0_5 = arith.constant 0 : index
    %c0_6 = arith.constant 0 : index
    %7 = vector.load %arg3[%c0_5, %c0_6] : memref<128x128xbf16, #tpu.memory_space<vmem>>, vector<128x128xbf16>
    %cst_7 = arith.constant dense<0.000000e+00> : vector<256x128xf32>
    %8 = tpu.matmul %6, %7, %cst_7 {dimension_numbers = #tpu.dot_dimension_numbers<[1], [0], [0], [1], [0, 0, 1, 1], [], []>} : vector<256x128xbf16>, vector<128x128xbf16>, vector<256x128xf32> -> vector<256x128xf32>
    %c0_8 = arith.constant 0 : index
    %c0_9 = arith.constant 0 : index
    %9 = vector.load %arg5[%c0_8, %c0_9] : memref<256x128xf32, #tpu.memory_space<vmem>>, vector<256x128xf32>
    tpu.vector_store %arg5[%c0_8, %c0_9], %8 {strides = array<i32>} : memref<256x128xf32, #tpu.memory_space<vmem>>, vector<256x128xf32>,
    return
  }
  func.func @transform_0(%arg0: i32) -> (i32, i32) {
    %c0_i32 = arith.constant 0 : i32
    %c0_i32_0 = arith.constant 0 : i32
    return %arg0, %c0_i32 : i32, i32
  }
  func.func @transform_1(%arg0: i32) -> (i32, i32) {
    %c0_i32 = arith.constant 0 : i32
    %c0_i32_0 = arith.constant 0 : i32
    %c0_i32_1 = arith.constant 0 : i32
    return %c0_i32, %c0_i32_0 : i32, i32
  }
  func.func @transform_2(%arg0: i32) -> (i32, i32) {
    %c0_i32 = arith.constant 0 : i32
    %c0_i32_0 = arith.constant 0 : i32
    %c0_i32_1 = arith.constant 0 : i32
    return %c0_i32, %c0_i32_0 : i32, i32
  }
  func.func @transform_3(%arg0: i32) -> (i32, i32) {
    %c0_i32 = arith.constant 0 : i32
    %c0_i32_0 = arith.constant 0 : i32
    return %arg0, %c0_i32 : i32, i32
  }
  func.func @transform_4(%arg0: i32) -> (i32, i32) {
    %c0_i32 = arith.constant 0 : i32
    %c0_i32_0 = arith.constant 0 : i32
    return %arg0, %c0_i32 : i32, i32
  }
}

module attributes {stable_mosaic.version = 11 : i64} {
  func.func @_cluster_head_kernel(%arg0: i32, %arg1: memref<1x128x128xf32, #tpu.memory_space<vmem>>, %arg2: memref<1x4x128xf32, #tpu.memory_space<vmem>>, %arg3: memref<1x1x128xi32, #tpu.memory_space<vmem>>, %arg4: memref<1x1x128xf32, #tpu.memory_space<vmem>>) attributes {dimension_semantics = [#tpu.dimension_semantics<parallel>], iteration_bounds = array<i64: 2>, scalar_prefetch = 0 : i64, scratch_operands = 0 : i64, tpu.core_type = #tpu.core_type<tc>, window_params = [{transform_indices = @transform_0, window_bounds = array<i64: 1, 128, 128>}, {transform_indices = @transform_1, window_bounds = array<i64: 1, 4, 128>}, {transform_indices = @transform_2, window_bounds = array<i64: 1, 1, 128>}, {transform_indices = @transform_3, window_bounds = array<i64: 1, 1, 128>}]} {
    %c0 = arith.constant 0 : index
    %c0_0 = arith.constant 0 : index
    %c0_1 = arith.constant 0 : index
    %0 = vector.load %arg1[%c0, %c0_0, %c0_1] : memref<1x128x128xf32, #tpu.memory_space<vmem>>, vector<1x128x128xf32>
    %1 = vector.shape_cast %0 : vector<1x128x128xf32> to vector<128x128xf32>
    %c0_2 = arith.constant 0 : index
    %c0_3 = arith.constant 0 : index
    %c0_4 = arith.constant 0 : index
    %2 = vector.load %arg2[%c0_2, %c0_3, %c0_4] : memref<1x4x128xf32, #tpu.memory_space<vmem>>, vector<1x4x128xf32>
    %3 = vector.shape_cast %2 : vector<1x4x128xf32> to vector<4x128xf32>
    %4 = tpu.transpose %1, [1, 0] : vector<128x128xf32> -> vector<128x128xf32>
    %cst = arith.constant dense<0.000000e+00> : vector<4x128xf32>
    %5 = tpu.matmul %3, %4, %cst {dimension_numbers = #tpu.dot_dimension_numbers<[1], [0], [0], [1], [0, 0, 1, 1], [], []>} : vector<4x128xf32>, vector<128x128xf32>, vector<4x128xf32> -> vector<4x128xf32>
    %6 = arith.mulf %3, %3 : vector<4x128xf32>
    %cst_5 = arith.constant dense<0.000000e+00> : vector<4xf32>
    %7 = vector.multi_reduction <add>, %6, %cst_5 [1] : vector<4x128xf32> to vector<4xf32>
    %8 = vector.shape_cast %7 : vector<4xf32> to vector<4x1xf32>
    %9 = arith.mulf %4, %4 : vector<128x128xf32>
    %cst_6 = arith.constant dense<0.000000e+00> : vector<128xf32>
    %10 = vector.multi_reduction <add>, %9, %cst_6 [0] : vector<128x128xf32> to vector<128xf32>
    %11 = vector.shape_cast %10 : vector<128xf32> to vector<1x128xf32>
    %12 = vector.broadcast %8 : vector<4x1xf32> to vector<4x128xf32>
    %13 = vector.broadcast %11 : vector<1x128xf32> to vector<4x128xf32>
    %14 = arith.addf %12, %13 : vector<4x128xf32>
    %cst_7 = arith.constant 2.000000e+00 : f32
    %15 = vector.broadcast %cst_7 : f32 to vector<4x128xf32>
    %16 = arith.mulf %15, %5 : vector<4x128xf32>
    %17 = arith.subf %14, %16 : vector<4x128xf32>
    %cst_8 = arith.constant 0.000000e+00 : f32
    %18 = vector.broadcast %cst_8 : f32 to vector<4x128xf32>
    %19 = arith.maximumf %17, %18 : vector<4x128xf32>
    %20 = math.sqrt %19 : vector<4x128xf32>
    %cst_9 = arith.constant 1.000000e+00 : f32
    %21 = vector.broadcast %cst_9 : f32 to vector<4x128xf32>
    %22 = arith.addf %21, %20 : vector<4x128xf32>
    %23 = tpu.reciprocal %22 : vector<4x128xf32> -> vector<4x128xf32>
    %cst_10 = arith.constant dense<0.000000e+00> : vector<128xf32>
    %24 = vector.multi_reduction <add>, %23, %cst_10 [0] : vector<4x128xf32> to vector<128xf32>
    %25 = vector.shape_cast %24 : vector<128xf32> to vector<1x128xf32>
    %cst_11 = arith.constant dense<0.000000e+00> : vector<4xf32>
    %26 = vector.multi_reduction <add>, %23, %cst_11 [1] : vector<4x128xf32> to vector<4xf32>
    %27 = vector.shape_cast %26 : vector<4xf32> to vector<4x1xf32>
    %28 = tpu.reciprocal %27 : vector<4x1xf32> -> vector<4x1xf32>
    %29 = arith.mulf %23, %23 : vector<4x128xf32>
    %30 = vector.broadcast %28 : vector<4x1xf32> to vector<4x128xf32>
    %31 = arith.mulf %29, %30 : vector<4x128xf32>
    %cst_12 = arith.constant dense<0.000000e+00> : vector<128xf32>
    %32 = vector.multi_reduction <add>, %31, %cst_12 [0] : vector<4x128xf32> to vector<128xf32>
    %33 = vector.shape_cast %32 : vector<128xf32> to vector<1x128xf32>
    %34 = tpu.reciprocal %33 : vector<1x128xf32> -> vector<1x128xf32>
    %35 = vector.broadcast %34 : vector<1x128xf32> to vector<4x128xf32>
    %36 = arith.mulf %31, %35 : vector<4x128xf32>
    %37 = vector.broadcast %28 : vector<4x1xf32> to vector<4x128xf32>
    %38 = arith.mulf %23, %37 : vector<4x128xf32>
    %39 = arith.mulf %25, %34 : vector<1x128xf32>
    %40 = vector.broadcast %39 : vector<1x128xf32> to vector<4x128xf32>
    %41 = arith.mulf %38, %40 : vector<4x128xf32>
    %cst_13 = arith.constant 0.000000e+00 : f32
    %42 = vector.broadcast %cst_13 : f32 to vector<4x128xf32>
    %43 = arith.cmpf ogt, %36, %42 : vector<4x128xf32>
    %44 = math.log %41 : vector<4x128xf32>
    %45 = arith.mulf %36, %44 : vector<4x128xf32>
    %cst_14 = arith.constant 0.000000e+00 : f32
    %46 = vector.broadcast %cst_14 : f32 to vector<4x128xf32>
    %47 = arith.select %43, %45, %46 : vector<4x128xi1>, vector<4x128xf32>
    %cst_15 = arith.constant dense<0.000000e+00> : vector<128xf32>
    %48 = vector.multi_reduction <add>, %47, %cst_15 [0] : vector<4x128xf32> to vector<128xf32>
    %49 = vector.shape_cast %48 : vector<128xf32> to vector<1x128xf32>
    %c0_16 = arith.constant 0 : index
    %c0_17 = arith.constant 0 : index
    %c0_18 = arith.constant 0 : index
    %50 = vector.load %arg4[%c0_16, %c0_17, %c0_18] : memref<1x1x128xf32, #tpu.memory_space<vmem>>, vector<1x1x128xf32>
    %51 = vector.shape_cast %50 : vector<1x1x128xf32> to vector<1x128xf32>
    %52 = vector.shape_cast %49 : vector<1x128xf32> to vector<1x1x128xf32>
    tpu.vector_store %arg4[%c0_16, %c0_17, %c0_18], %52 {strides = array<i32>} : memref<1x1x128xf32, #tpu.memory_space<vmem>>, vector<1x1x128xf32>,
    %53 = tpu.iota {dimensions = array<i32: 0>} : vector<4x128xi32>
    %cst_19 = arith.constant dense<0x7F800000> : vector<128xf32>
    %54 = vector.multi_reduction <minimumf>, %20, %cst_19 [0] : vector<4x128xf32> to vector<128xf32>
    %55 = vector.shape_cast %54 : vector<128xf32> to vector<1x128xf32>
    %56 = vector.broadcast %55 : vector<1x128xf32> to vector<4x128xf32>
    %57 = arith.cmpf ole, %20, %56 : vector<4x128xf32>
    %c4_i32 = arith.constant 4 : i32
    %58 = vector.broadcast %c4_i32 : i32 to vector<4x128xi32>
    %59 = arith.select %57, %53, %58 : vector<4x128xi1>, vector<4x128xi32>
    %cst_20 = arith.constant dense<2147483647> : vector<128xi32>
    %60 = vector.multi_reduction <minsi>, %59, %cst_20 [0] : vector<4x128xi32> to vector<128xi32>
    %61 = vector.shape_cast %60 : vector<128xi32> to vector<1x128xi32>
    %c0_21 = arith.constant 0 : index
    %c0_22 = arith.constant 0 : index
    %c0_23 = arith.constant 0 : index
    %62 = vector.load %arg3[%c0_21, %c0_22, %c0_23] : memref<1x1x128xi32, #tpu.memory_space<vmem>>, vector<1x1x128xi32>
    %63 = vector.shape_cast %62 : vector<1x1x128xi32> to vector<1x128xi32>
    %64 = vector.shape_cast %61 : vector<1x128xi32> to vector<1x1x128xi32>
    tpu.vector_store %arg3[%c0_21, %c0_22, %c0_23], %64 {strides = array<i32>} : memref<1x1x128xi32, #tpu.memory_space<vmem>>, vector<1x1x128xi32>,
    return
  }
  func.func @transform_0(%arg0: i32) -> (i32, i32, i32) {
    %c0_i32 = arith.constant 0 : i32
    %c0_i32_0 = arith.constant 0 : i32
    %c0_i32_1 = arith.constant 0 : i32
    return %arg0, %c0_i32, %c0_i32_0 : i32, i32, i32
  }
  func.func @transform_1(%arg0: i32) -> (i32, i32, i32) {
    %c0_i32 = arith.constant 0 : i32
    %c0_i32_0 = arith.constant 0 : i32
    %c0_i32_1 = arith.constant 0 : i32
    return %arg0, %c0_i32, %c0_i32_0 : i32, i32, i32
  }
  func.func @transform_2(%arg0: i32) -> (i32, i32, i32) {
    %c0_i32 = arith.constant 0 : i32
    %c0_i32_0 = arith.constant 0 : i32
    %c0_i32_1 = arith.constant 0 : i32
    return %arg0, %c0_i32, %c0_i32_0 : i32, i32, i32
  }
  func.func @transform_3(%arg0: i32) -> (i32, i32, i32) {
    %c0_i32 = arith.constant 0 : i32
    %c0_i32_0 = arith.constant 0 : i32
    %c0_i32_1 = arith.constant 0 : i32
    return %arg0, %c0_i32, %c0_i32_0 : i32, i32, i32
  }
}

</mosaic_0001>

<bundles_post_ra>
// kernel: clusternet_forward.2
= control target key start
LH: loop header
LB: loop body
LE: loop exit
PB: predicated region body
PF: predicated region fallthrough
CT: control target
= control target key end

     0   :  { %s1195_s0 = inlined_call_operand.vmem [shape: f32[256,128], index: 0, kind: input, shape index: {}]   ;;  %s1196_s1 = inlined_call_operand.vmem [shape: bf16[128,128], index: 1, kind: input, shape index: {}]   ;;  %s1197_s2 = inlined_call_operand.vmem [shape: bf16[128,128], index: 2, kind: input, shape index: {}]   ;;  %s1198_s3 = inlined_call_operand.vmem [shape: f32[256,128], index: 3, kind: output, shape index: {0}]   ;;  %s1199_s4 = inlined_call_operand.hbm [shape: f32[256,128], index: 4, kind: output, shape index: {1}]  }
   0x1   :  { %v811_v0 = vld [vmem:[%s1196_s1] sm:$0xff]   ;;  %v812_v1 = vld [vmem:[%s1196_s1 + $0x8] sm:$0xff]   ;;  %v813_v2 = vld [vmem:[%s1196_s1 + $0x10] sm:$0xff]  }
   0x2   :  { %712 = vmatprep.subr.bf16.mxu0 %v811_v0  ;;  %v814_v3 = vld [vmem:[%s1196_s1 + $0x18] sm:$0xff]   ;;  %v18_v4 = vld [vmem:[%s1195_s0] sm:$0xff]  ;;  %v19_v5 = vld [vmem:[%s1195_s0 + $0x8] sm:$0xff] }
   0x3   :  { %713 = vmatpush3.bf16.msra.mxu0 %v811_v0  ;;  %v50_v6 = vpack.c.bf16 %v19_v5, %v18_v4  ;;  %v815_v7 = vld [vmem:[%s1196_s1 + $0x20] sm:$0xff]   ;;  %v816_v8 = vld [vmem:[%s1196_s1 + $0x28] sm:$0xff]   ;;  %v817_v9 = vld [vmem:[%s1196_s1 + $0x30] sm:$0xff]  }
   0x4   :  { %714 = vmatprep.subr.bf16.mxu0 %v812_v1  ;;  %v819_v10 = vld [vmem:[%s1197_s2] sm:$0xff]   ;;  %v820_v11 = vld [vmem:[%s1197_s2 + $0x8] sm:$0xff]   ;;  %v818_v12 = vld [vmem:[%s1196_s1 + $0x38] sm:$0xff]  }
   0x5   :  { %728 = vmatprep.mubr.bf16.mxu0 %v50_v6  ;;  %760 = vmatprep.subr.bf16.mxu1 %v819_v10  ;;  %v821_v13 = vld [vmem:[%s1197_s2 + $0x10] sm:$0xff]  }
   0x6   :  { %761 = vmatpush3.bf16.msra.mxu1 %v819_v10 }
   0x7   :  { %715 = vmatpush3.bf16.msra.mxu0 %v812_v1  ;;  %762 = vmatprep.subr.bf16.mxu1 %v820_v11 }
   0x8   :  { %716 = vmatprep.subr.bf16.mxu0 %v813_v2 }
   0xb   :  { %717 = vmatpush3.bf16.msra.mxu0 %v813_v2 }
   0xc   :  { %718 = vmatprep.subr.bf16.mxu0 %v814_v3 }
   0xf   :  { %719 = vmatpush3.bf16.msra.mxu0 %v814_v3 }
  0x10   :  { %720 = vmatprep.subr.bf16.mxu0 %v815_v7 }
  0x13   :  { %721 = vmatpush3.bf16.msra.mxu0 %v815_v7 }
  0x14   :  { %722 = vmatprep.subr.bf16.mxu0 %v816_v8 }
  0x17   :  { %723 = vmatpush3.bf16.msra.mxu0 %v816_v8 }
  0x18   :  { %724 = vmatprep.subr.bf16.mxu0 %v817_v9 }
  0x19   :  { %10 = vsyncpa [#allocation3], 0  ;;  %763 = vmatpush3.bf16.msra.mxu1 %v820_v11  ;;  %v20_v14 = vld [vmem:[%s1195_s0 + $0x10] sm:$0xff]  ;;  %v21_v15 = vld [vmem:[%s1195_s0 + $0x18] sm:$0xff] }
  0x1a   :  { %764 = vmatprep.subr.bf16.mxu1 %v821_v13  ;;  %v822_v16 = vld [vmem:[%s1197_s2 + $0x18] sm:$0xff]   ;;  %v22_v17 = vld [vmem:[%s1195_s0 + $0x20] sm:$0xff]  ;;  %v23_v18 = vld [vmem:[%s1195_s0 + $0x28] sm:$0xff]  ;;  %v51_v19 = vpack.c.bf16 %v21_v15, %v20_v14 }
  0x1b   :  { %725 = vmatpush3.bf16.msra.mxu0 %v817_v9  ;;  %v52_v20 = vpack.c.bf16 %v23_v18, %v22_v17  ;;  %v24_v21 = vld [vmem:[%s1195_s0 + $0x30] sm:$0xff]  ;;  %v25_v22 = vld [vmem:[%s1195_s0 + $0x38] sm:$0xff]  ;;  %v26_v23 = vld [vmem:[%s1195_s0 + $0x40] sm:$0xff] }
  0x1c   :  { %726 = vmatprep.subr.bf16.mxu0 %v818_v12  ;;  %v27_v24 = vld [vmem:[%s1195_s0 + $0x48] sm:$0xff]  ;;  %v53_v25 = vpack.c.bf16 %v25_v22, %v24_v21  ;;  %v28_v27 = vld [vmem:[%s1195_s0 + $0x50] sm:$0xff]  ;;  %v29_v28 = vld [vmem:[%s1195_s0 + $0x58] sm:$0xff] }
  0x1d   :  { %765 = vmatpush3.bf16.msra.mxu1 %v821_v13  ;;  %v54_v26 = vpack.c.bf16 %v27_v24, %v26_v23  ;;  %v30_v29 = vld [vmem:[%s1195_s0 + $0x60] sm:$0xff]  ;;  %v31_v30 = vld [vmem:[%s1195_s0 + $0x68] sm:$0xff]  ;;  %v55_v31 = vpack.c.bf16 %v29_v28, %v28_v27  ;;  %v32_v33 = vld [vmem:[%s1195_s0 + $0x70] sm:$0xff] }
  0x1e   :  { %766 = vmatprep.subr.bf16.mxu1 %v822_v16  ;;  %v56_v32 = vpack.c.bf16 %v31_v30, %v30_v29  ;;  %v33_v34 = vld [vmem:[%s1195_s0 + $0x78] sm:$0xff]  ;;  %v34_v35 = vld [vmem:[%s1195_s0 + $0x80] sm:$0xff]  ;;  %v35_v36 = vld [vmem:[%s1195_s0 + $0x88] sm:$0xff] }
  0x1f   :  { %727 = vmatpush3.bf16.msra.mxu0 %v818_v12  ;;  %v57_v37 = vpack.c.bf16 %v33_v34, %v32_v33  ;;  %v58_v38 = vpack.c.bf16 %v35_v36, %v34_v35  ;;  %v36_v39 = vld [vmem:[%s1195_s0 + $0x90] sm:$0xff]  ;;  %v37_v40 = vld [vmem:[%s1195_s0 + $0x98] sm:$0xff]  ;;  %v38_v41 = vld [vmem:[%s1195_s0 + $0xa0] sm:$0xff] }
  0x20   :  { %v39_v42 = vld [vmem:[%s1195_s0 + $0xa8] sm:$0xff]  ;;  %v59_v43 = vpack.c.bf16 %v37_v40, %v36_v39  ;;  %v40_v45 = vld [vmem:[%s1195_s0 + $0xb0] sm:$0xff]  ;;  %v41_v46 = vld [vmem:[%s1195_s0 + $0xb8] sm:$0xff] }
  0x21   :  { %767 = vmatpush3.bf16.msra.mxu1 %v822_v16  ;;  %v60_v44 = vpack.c.bf16 %v39_v42, %v38_v41  ;;  %v42_v47 = vld [vmem:[%s1195_s0 + $0xc0] sm:$0xff]  ;;  %v43_v48 = vld [vmem:[%s1195_s0 + $0xc8] sm:$0xff]  ;;  %v61_v49 = vpack.c.bf16 %v41_v46, %v40_v45  ;;  %v44_v51 = vld [vmem:[%s1195_s0 + $0xd0] sm:$0xff] }
  0x22   :  { %729 = vmatmul.mubr.bf16.vlgmr.msra.gmra.mrb[0].mxu0 %v51_v19  ;;  %v62_v50 = vpack.c.bf16 %v43_v48, %v42_v47  ;;  %v45_v52 = vld [vmem:[%s1195_s0 + $0xd8] sm:$0xff]  ;;  %v46_v53 = vld [vmem:[%s1195_s0 + $0xe0] sm:$0xff]  ;;  %v47_v54 = vld [vmem:[%s1195_s0 + $0xe8] sm:$0xff] }
  0x23   :  { %732 = vmatprep.mubr.bf16.mxu0 %v52_v20  ;;  %v63_v55 = vpack.c.bf16 %v45_v52, %v44_v51  ;;  %v64_v56 = vpack.c.bf16 %v47_v54, %v46_v53  ;;  %v48_v57 = vld [vmem:[%s1195_s0 + $0xf0] sm:$0xff]  ;;  %v49_v58 = vld [vmem:[%s1195_s0 + $0xf8] sm:$0xff]  ;;  %v823_v60 = vld [vmem:[%s1197_s2 + $0x20] sm:$0xff]  }
  0x24   :  { %v65_v59 = vpack.c.bf16 %v49_v58, %v48_v57  ;;  %768 = vmatprep.subr.bf16.mxu1 %v823_v60  ;;  %v824_v61 = vld [vmem:[%s1197_s2 + $0x28] sm:$0xff]   ;;  %v825_v62 = vld [vmem:[%s1197_s2 + $0x30] sm:$0xff]   ;;  %v826_v63 = vld [vmem:[%s1197_s2 + $0x38] sm:$0xff]  }
  0x25   :  { %769 = vmatpush3.bf16.msra.mxu1 %v823_v60 }
  0x26   :  { %770 = vmatprep.subr.bf16.mxu1 %v824_v61 }
  0x29   :  { %771 = vmatpush3.bf16.msra.mxu1 %v824_v61 }
  0x2a   :  { %733 = vmatmul.mubr.bf16.gmra.mrb[4].mxu0 %v53_v25  ;;  %772 = vmatprep.subr.bf16.mxu1 %v825_v62 }
  0x2b   :  { %736 = vmatprep.mubr.bf16.mxu0 %v54_v26 }
  0x2d   :  { %773 = vmatpush3.bf16.msra.mxu1 %v825_v62 }
  0x2e   :  { %774 = vmatprep.subr.bf16.mxu1 %v826_v63 }
  0x31   :  { %775 = vmatpush3.bf16.msra.mxu1 %v826_v63 }
  0x32   :  { %737 = vmatmul.mubr.bf16.gmra.mrb[8].mxu0 %v55_v31 }
  0x33   :  { %740 = vmatprep.mubr.bf16.mxu0 %v56_v32 }
  0x3a   :  { %741 = vmatmul.mubr.bf16.gmra.mrb[12].mxu0 %v57_v37 }
  0x3b   :  { %744 = vmatprep.mubr.bf16.mxu0 %v58_v38 }
  0x42   :  { %745 = vmatmul.mubr.bf16.gmra.mrb[16].mxu0 %v59_v43 }
  0x43   :  { %748 = vmatprep.mubr.bf16.mxu0 %v60_v44 }
  0x4a   :  { %749 = vmatmul.mubr.bf16.gmra.mrb[20].mxu0 %v61_v49 }
  0x4b   :  { %752 = vmatprep.mubr.bf16.mxu0 %v62_v50 }
  0x52   :  { %753 = vmatmul.mubr.bf16.gmra.mrb[24].mxu0 %v63_v55 }
  0x53   :  { %756 = vmatprep.mubr.bf16.mxu0 %v64_v56 }
  0x5a   :  { %757 = vmatmul.mubr.bf16.gmra.mrb[28].mxu0 %v65_v59 }
  0xf5   :  { %v730_v0 = vpop.f32.mrb[0].mxu0 }
  0xf6   :  { %827 = vtanh.f32 %v730_v0  ;;  %v164_v1 = vpop.f32.mrb[1].mxu0 }
  0xf7   :  { %829 = vtanh.f32 %v164_v1  ;;  %v731_v2 = vpop.f32.mrb[2].mxu0 }
  0xf8   :  { %831 = vtanh.f32 %v731_v2  ;;  %v167_v3 = vpop.f32.mrb[3].mxu0 }
  0xf9   :  { %833 = vtanh.f32 %v167_v3 }
  0xfd   :  { %v734_v4 = vpop.f32.mrb[4].mxu0 }
  0xfe   :  { %835 = vtanh.f32 %v734_v4  ;;  %v180_v5 = vpop.f32.mrb[5].mxu0 }
  0xff   :  { %837 = vtanh.f32 %v180_v5  ;;  %v735_v6 = vpop.f32.mrb[6].mxu0 }
 0x100   :  { %v828_v7 = vpop.eup %827  ;;  %839 = vtanh.f32 %v735_v6  ;;  %v183_v8 = vpop.f32.mrb[7].mxu0 }
 0x101   :  { %v830_v9 = vpop.eup %829  ;;  %325 = vst [vmem:[%s1198_s3 + $0x10] sm:$0xff] %v828_v7  ;;  %841 = vtanh.f32 %v183_v8 }
 0x102   :  { %v832_v10 = vpop.eup %831  ;;  %323 = vst [vmem:[%s1198_s3] sm:$0xff] %v830_v9 }
 0x103   :  { %v834_v11 = vpop.eup %833  ;;  %326 = vst [vmem:[%s1198_s3 + $0x18] sm:$0xff] %v832_v10  ;;  %v356_v12 = vpack.c.bf16 %v832_v10, %v828_v7 }
 0x104   :  { %324 = vst [vmem:[%s1198_s3 + $0x8] sm:$0xff] %v834_v11  ;;  %v355_v13 = vpack.c.bf16 %v834_v11, %v830_v9 }
 0x105   :  { %v738_v14 = vpop.f32.mrb[8].mxu0 }
 0x106   :  { %843 = vtanh.f32 %v738_v14  ;;  %v196_v15 = vpop.f32.mrb[9].mxu0  ;;  %776 = vmatprep.mubr.bf16.mxu1 %v355_v13 }
 0x107   :  { %845 = vtanh.f32 %v196_v15  ;;  %v739_v16 = vpop.f32.mrb[10].mxu0  ;;  %777 = vmatmul.mubr.bf16.vlgmr.msra.gmra.mrb[0].mxu1 %v356_v12 }
 0x108   :  { %v836_v17 = vpop.eup %835  ;;  %847 = vtanh.f32 %v739_v16  ;;  %v199_v18 = vpop.f32.mrb[11].mxu0 }
 0x109   :  { %v838_v19 = vpop.eup %837  ;;  %329 = vst [vmem:[%s1198_s3 + $0x30] sm:$0xff] %v836_v17  ;;  %849 = vtanh.f32 %v199_v18 }
 0x10a   :  { %v840_v20 = vpop.eup %839  ;;  %327 = vst [vmem:[%s1198_s3 + $0x20] sm:$0xff] %v838_v19 }
 0x10b   :  { %v842_v21 = vpop.eup %841  ;;  %330 = vst [vmem:[%s1198_s3 + $0x38] sm:$0xff] %v840_v20  ;;  %v358_v22 = vpack.c.bf16 %v840_v20, %v836_v17 }
 0x10c   :  { %328 = vst [vmem:[%s1198_s3 + $0x28] sm:$0xff] %v842_v21  ;;  %v357_v23 = vpack.c.bf16 %v842_v21, %v838_v19 }
 0x10d   :  { %v742_v24 = vpop.f32.mrb[12].mxu0 }
 0x10e   :  { %851 = vtanh.f32 %v742_v24  ;;  %v212_v25 = vpop.f32.mrb[13].mxu0  ;;  %780 = vmatprep.mubr.bf16.mxu1 %v357_v23 }
 0x10f   :  { %853 = vtanh.f32 %v212_v25  ;;  %v743_v26 = vpop.f32.mrb[14].mxu0  ;;  %781 = vmatmul.mubr.bf16.gmra.mrb[4].mxu1 %v358_v22 }
 0x110   :  { %v844_v27 = vpop.eup %843  ;;  %855 = vtanh.f32 %v743_v26  ;;  %v215_v28 = vpop.f32.mrb[15].mxu0 }
 0x111   :  { %v846_v29 = vpop.eup %845  ;;  %333 = vst [vmem:[%s1198_s3 + $0x50] sm:$0xff] %v844_v27  ;;  %857 = vtanh.f32 %v215_v28 }
 0x112   :  { %v848_v30 = vpop.eup %847  ;;  %331 = vst [vmem:[%s1198_s3 + $0x40] sm:$0xff] %v846_v29 }
 0x113   :  { %v850_v31 = vpop.eup %849  ;;  %334 = vst [vmem:[%s1198_s3 + $0x58] sm:$0xff] %v848_v30  ;;  %v360_v32 = vpack.c.bf16 %v848_v30, %v844_v27 }
 0x114   :  { %332 = vst [vmem:[%s1198_s3 + $0x48] sm:$0xff] %v850_v31  ;;  %v359_v33 = vpack.c.bf16 %v850_v31, %v846_v29 }
 0x115   :  { %v746_v34 = vpop.f32.mrb[16].mxu0 }
 0x116   :  { %859 = vtanh.f32 %v746_v34  ;;  %v228_v35 = vpop.f32.mrb[17].mxu0  ;;  %784 = vmatprep.mubr.bf16.mxu1 %v359_v33 }
 0x117   :  { %861 = vtanh.f32 %v228_v35  ;;  %v747_v36 = vpop.f32.mrb[18].mxu0  ;;  %785 = vmatmul.mubr.bf16.gmra.mrb[8].mxu1 %v360_v32 }
 0x118   :  { %v852_v37 = vpop.eup %851  ;;  %863 = vtanh.f32 %v747_v36  ;;  %v231_v38 = vpop.f32.mrb[19].mxu0 }
 0x119   :  { %v854_v39 = vpop.eup %853  ;;  %337 = vst [vmem:[%s1198_s3 + $0x70] sm:$0xff] %v852_v37  ;;  %865 = vtanh.f32 %v231_v38 }
 0x11a   :  { %v856_v40 = vpop.eup %855  ;;  %335 = vst [vmem:[%s1198_s3 + $0x60] sm:$0xff] %v854_v39 }
 0x11b   :  { %v858_v41 = vpop.eup %857  ;;  %338 = vst [vmem:[%s1198_s3 + $0x78] sm:$0xff] %v856_v40  ;;  %v362_v42 = vpack.c.bf16 %v856_v40, %v852_v37 }
 0x11c   :  { %336 = vst [vmem:[%s1198_s3 + $0x68] sm:$0xff] %v858_v41  ;;  %v361_v43 = vpack.c.bf16 %v858_v41, %v854_v39 }
 0x11d   :  { %v750_v44 = vpop.f32.mrb[20].mxu0 }
 0x11e   :  { %867 = vtanh.f32 %v750_v44  ;;  %v244_v45 = vpop.f32.mrb[21].mxu0  ;;  %788 = vmatprep.mubr.bf16.mxu1 %v361_v43 }
 0x11f   :  { %869 = vtanh.f32 %v244_v45  ;;  %v751_v46 = vpop.f32.mrb[22].mxu0  ;;  %789 = vmatmul.mubr.bf16.gmra.mrb[12].mxu1 %v362_v42 }
 0x120   :  { %v860_v47 = vpop.eup %859  ;;  %871 = vtanh.f32 %v751_v46  ;;  %v247_v48 = vpop.f32.mrb[23].mxu0 }
 0x121   :  { %v862_v49 = vpop.eup %861  ;;  %341 = vst [vmem:[%s1198_s3 + $0x90] sm:$0xff] %v860_v47  ;;  %873 = vtanh.f32 %v247_v48 }
 0x122   :  { %v864_v50 = vpop.eup %863  ;;  %339 = vst [vmem:[%s1198_s3 + $0x80] sm:$0xff] %v862_v49 }
 0x123   :  { %v866_v51 = vpop.eup %865  ;;  %342 = vst [vmem:[%s1198_s3 + $0x98] sm:$0xff] %v864_v50  ;;  %v364_v52 = vpack.c.bf16 %v864_v50, %v860_v47 }
 0x124   :  { %340 = vst [vmem:[%s1198_s3 + $0x88] sm:$0xff] %v866_v51  ;;  %v363_v53 = vpack.c.bf16 %v866_v51, %v862_v49 }
 0x125   :  { %v754_v54 = vpop.f32.mrb[24].mxu0 }
 0x126   :  { %875 = vtanh.f32 %v754_v54  ;;  %v260_v55 = vpop.f32.mrb[25].mxu0  ;;  %792 = vmatprep.mubr.bf16.mxu1 %v363_v53 }
 0x127   :  { %877 = vtanh.f32 %v260_v55  ;;  %v755_v56 = vpop.f32.mrb[26].mxu0  ;;  %793 = vmatmul.mubr.bf16.gmra.mrb[16].mxu1 %v364_v52 }
 0x128   :  { %v868_v57 = vpop.eup %867  ;;  %879 = vtanh.f32 %v755_v56  ;;  %v263_v58 = vpop.f32.mrb[27].mxu0 }
 0x129   :  { %v870_v59 = vpop.eup %869  ;;  %345 = vst [vmem:[%s1198_s3 + $0xb0] sm:$0xff] %v868_v57  ;;  %881 = vtanh.f32 %v263_v58 }
 0x12a   :  { %v872_v60 = vpop.eup %871  ;;  %343 = vst [vmem:[%s1198_s3 + $0xa0] sm:$0xff] %v870_v59 }
 0x12b   :  { %v874_v61 = vpop.eup %873  ;;  %346 = vst [vmem:[%s1198_s3 + $0xb8] sm:$0xff] %v872_v60  ;;  %v366_v62 = vpack.c.bf16 %v872_v60, %v868_v57 }
 0x12c   :  { %344 = vst [vmem:[%s1198_s3 + $0xa8] sm:$0xff] %v874_v61  ;;  %v365_v63 = vpack.c.bf16 %v874_v61, %v870_v59 }
 0x12d   :  { %v758_v0 = vpop.f32.mrb[28].mxu0 }
 0x12e   :  { %883 = vtanh.f32 %v758_v0  ;;  %v276_v1 = vpop.f32.mrb[29].mxu0  ;;  %796 = vmatprep.mubr.bf16.mxu1 %v365_v63 }
 0x12f   :  { %885 = vtanh.f32 %v276_v1  ;;  %v759_v2 = vpop.f32.mrb[30].mxu0  ;;  %797 = vmatmul.mubr.bf16.gmra.mrb[20].mxu1 %v366_v62 }
 0x130   :  { %v876_v3 = vpop.eup %875  ;;  %887 = vtanh.f32 %v759_v2  ;;  %v279_v4 = vpop.f32.mrb[31].mxu0 }
 0x131   :  { %v878_v5 = vpop.eup %877  ;;  %349 = vst [vmem:[%s1198_s3 + $0xd0] sm:$0xff] %v876_v3  ;;  %889 = vtanh.f32 %v279_v4 }
 0x132   :  { %v880_v6 = vpop.eup %879  ;;  %347 = vst [vmem:[%s1198_s3 + $0xc0] sm:$0xff] %v878_v5 }
 0x133   :  { %v882_v7 = vpop.eup %881  ;;  %350 = vst [vmem:[%s1198_s3 + $0xd8] sm:$0xff] %v880_v6  ;;  %v368_v8 = vpack.c.bf16 %v880_v6, %v876_v3 }
 0x134   :  { %348 = vst [vmem:[%s1198_s3 + $0xc8] sm:$0xff] %v882_v7  ;;  %v367_v9 = vpack.c.bf16 %v882_v7, %v878_v5 }
 0x136   :  { %800 = vmatprep.mubr.bf16.mxu1 %v367_v9 }
 0x137   :  { %801 = vmatmul.mubr.bf16.gmra.mrb[24].mxu1 %v368_v8 }
 0x138   :  { %v884_v10 = vpop.eup %883 }
 0x139   :  { %v886_v11 = vpop.eup %885  ;;  %353 = vst [vmem:[%s1198_s3 + $0xf0] sm:$0xff] %v884_v10 }
 0x13a   :  { %v888_v12 = vpop.eup %887  ;;  %351 = vst [vmem:[%s1198_s3 + $0xe0] sm:$0xff] %v886_v11 }
 0x13b   :  { %v890_v13 = vpop.eup %889  ;;  %354 = vst [vmem:[%s1198_s3 + $0xf8] sm:$0xff] %v888_v12  ;;  %v370_v14 = vpack.c.bf16 %v888_v12, %v884_v10 }
 0x13c   :  { %352 = vst [vmem:[%s1198_s3 + $0xe8] sm:$0xff] %v890_v13  ;;  %v369_v15 = vpack.c.bf16 %v890_v13, %v886_v11  ;;  %s915_s3 = smov [#allocation2]  }
 0x13d   :  { %s635_s8 = sshll.u32 %s915_s3, 4  ;;  %s636_s8 = int_to_ptr.vmem [resolvable:$true] %s635_s8 }
 0x13e   :  { %804 = vmatprep.mubr.bf16.mxu1 %v369_v15  ;;  %s891_s9 = scalar_lea.vmem %s636_s8, 4096  ;;  %p896_p1 = scmp.lt.s32.totalorder %s636_s8, %s636_s8 }
 0x13f   :  { %805 = vmatmul.mubr.bf16.gmra.mrb[28].mxu1 %v370_v14  ;;  %p892_p0 = scmp.ne.s32.totalorder %s636_s8, %s891_s9  ;;  %p897_p2 = scmp.lt.s32.totalorder %s891_s9, %s891_s9 }
 0x141   :  { %p898_p3 = por %p897_p2, %p896_p1 }
 0x143   :  { %p899_p4 = pnand %p898_p3, %p892_p0 }
 0x1da   :  { %v778_v16 = vpop.f32.mrb[0].mxu1 }
 0x1db   :  { %598 = vst [vmem:[#allocation2 + $0x10] sm:$0xff] %v778_v16  ;;  %v469_v17 = vpop.f32.mrb[1].mxu1 }
 0x1dc   :  { %596 = vst [vmem:[#allocation2] sm:$0xff] %v469_v17  ;;  %v779_v18 = vpop.f32.mrb[2].mxu1 }
 0x1dd   :  { %599 = vst [vmem:[#allocation2 + $0x18] sm:$0xff] %v779_v18  ;;  %v472_v19 = vpop.f32.mrb[3].mxu1 }
 0x1de   :  { %597 = vst [vmem:[#allocation2 + $0x8] sm:$0xff] %v472_v19 }
 0x1e2   :  { %v782_v20 = vpop.f32.mrb[4].mxu1 }
 0x1e3   :  { %602 = vst [vmem:[#allocation2 + $0x30] sm:$0xff] %v782_v20  ;;  %v485_v21 = vpop.f32.mrb[5].mxu1 }
 0x1e4   :  { %600 = vst [vmem:[#allocation2 + $0x20] sm:$0xff] %v485_v21  ;;  %v783_v22 = vpop.f32.mrb[6].mxu1 }
 0x1e5   :  { %603 = vst [vmem:[#allocation2 + $0x38] sm:$0xff] %v783_v22  ;;  %v488_v23 = vpop.f32.mrb[7].mxu1 }
 0x1e6   :  { %601 = vst [vmem:[#allocation2 + $0x28] sm:$0xff] %v488_v23 }
 0x1ea   :  { %v786_v24 = vpop.f32.mrb[8].mxu1 }
 0x1eb   :  { %606 = vst [vmem:[#allocation2 + $0x50] sm:$0xff] %v786_v24  ;;  %v501_v25 = vpop.f32.mrb[9].mxu1 }
 0x1ec   :  { %604 = vst [vmem:[#allocation2 + $0x40] sm:$0xff] %v501_v25  ;;  %v787_v26 = vpop.f32.mrb[10].mxu1 }
 0x1ed   :  { %607 = vst [vmem:[#allocation2 + $0x58] sm:$0xff] %v787_v26  ;;  %v504_v27 = vpop.f32.mrb[11].mxu1 }
 0x1ee   :  { %605 = vst [vmem:[#allocation2 + $0x48] sm:$0xff] %v504_v27 }
 0x1f2   :  { %v790_v28 = vpop.f32.mrb[12].mxu1 }
 0x1f3   :  { %610 = vst [vmem:[#allocation2 + $0x70] sm:$0xff] %v790_v28  ;;  %v517_v29 = vpop.f32.mrb[13].mxu1 }
 0x1f4   :  { %608 = vst [vmem:[#allocation2 + $0x60] sm:$0xff] %v517_v29  ;;  %v791_v30 = vpop.f32.mrb[14].mxu1 }
 0x1f5   :  { %611 = vst [vmem:[#allocation2 + $0x78] sm:$0xff] %v791_v30  ;;  %v520_v31 = vpop.f32.mrb[15].mxu1 }
 0x1f6   :  { %609 = vst [vmem:[#allocation2 + $0x68] sm:$0xff] %v520_v31 }
 0x1fa   :  { %v794_v32 = vpop.f32.mrb[16].mxu1 }
 0x1fb   :  { %614 = vst [vmem:[#allocation2 + $0x90] sm:$0xff] %v794_v32  ;;  %v533_v33 = vpop.f32.mrb[17].mxu1 }
 0x1fc   :  { %612 = vst [vmem:[#allocation2 + $0x80] sm:$0xff] %v533_v33  ;;  %v795_v34 = vpop.f32.mrb[18].mxu1 }
 0x1fd   :  { %615 = vst [vmem:[#allocation2 + $0x98] sm:$0xff] %v795_v34  ;;  %v536_v35 = vpop.f32.mrb[19].mxu1 }
 0x1fe   :  { %613 = vst [vmem:[#allocation2 + $0x88] sm:$0xff] %v536_v35 }
 0x202   :  { %v798_v36 = vpop.f32.mrb[20].mxu1 }
 0x203   :  { %618 = vst [vmem:[#allocation2 + $0xb0] sm:$0xff] %v798_v36  ;;  %v549_v37 = vpop.f32.mrb[21].mxu1 }
 0x204   :  { %616 = vst [vmem:[#allocation2 + $0xa0] sm:$0xff] %v549_v37  ;;  %v799_v38 = vpop.f32.mrb[22].mxu1 }
 0x205   :  { %619 = vst [vmem:[#allocation2 + $0xb8] sm:$0xff] %v799_v38  ;;  %v552_v39 = vpop.f32.mrb[23].mxu1 }
 0x206   :  { %617 = vst [vmem:[#allocation2 + $0xa8] sm:$0xff] %v552_v39 }
 0x20a   :  { %v802_v40 = vpop.f32.mrb[24].mxu1 }
 0x20b   :  { %622 = vst [vmem:[#allocation2 + $0xd0] sm:$0xff] %v802_v40  ;;  %v565_v41 = vpop.f32.mrb[25].mxu1 }
 0x20c   :  { %620 = vst [vmem:[#allocation2 + $0xc0] sm:$0xff] %v565_v41  ;;  %v803_v42 = vpop.f32.mrb[26].mxu1 }
 0x20d   :  { %623 = vst [vmem:[#allocation2 + $0xd8] sm:$0xff] %v803_v42  ;;  %v568_v43 = vpop.f32.mrb[27].mxu1 }
 0x20e   :  { %621 = vst [vmem:[#allocation2 + $0xc8] sm:$0xff] %v568_v43 }
 0x212   :  { %v806_v44 = vpop.f32.mrb[28].mxu1 }
 0x213   :  { %626 = vst [vmem:[#allocation2 + $0xf0] sm:$0xff] %v806_v44  ;;  %v581_v45 = vpop.f32.mrb[29].mxu1 }
 0x214   :  { %624 = vst [vmem:[#allocation2 + $0xe0] sm:$0xff] %v581_v45  ;;  %v807_v46 = vpop.f32.mrb[30].mxu1 }
 0x215   :  { %627 = vst [vmem:[#allocation2 + $0xf8] sm:$0xff] %v807_v46  ;;  %v584_v47 = vpop.f32.mrb[31].mxu1 }
 0x216   :  { %625 = vst [vmem:[#allocation2 + $0xe8] sm:$0xff] %v584_v47 }
 0x217   :  { %902 = shalt.err (!%p899_p4)
}
 0x218   :  { %s903_s12 = scalar_lea.hbm %s1199_s4, 4096 }
 0x219   :  { %p904_p5 = scmp.ne.s32.totalorder %s1199_s4, %s903_s12  ;;  %p907_p6 = scmp.lt.u32.totalorder %s903_s12, %s1199_s4 }
 0x21b   :  { %p909_p7 = pnand %p907_p6, %p904_p5 }
 0x21d   :  { %912 = shalt.err (!%p909_p7)
}
 0x21e   :  { %s916_s17 = smov 128   ;;  %s917_s18 = smov 8  }
 0x21f   :  { %641 = dma.vmem_to_hbm [thread:$0]  %s636_s8, 4096, %s1199_s4, [#allocation3], %s916_s17, %s916_s17, %s917_s18  }
 0x220   :  { %913 = dma.done.wait [#allocation3], 4096  }
 0x221   :  { %914 = vsyncadd [#allocation3], 4294963200 }
 0x222   :  { %647 = vsyncpa [#allocation3], 1 }

// kernel: clusternet_forward.3
= control target key start
LH: loop header
LB: loop body
LE: loop exit
PB: predicated region body
PF: predicated region fallthrough
CT: control target
= control target key end

     0   :  { %s649_s12 = smov 0   ;;  %s715_s0 = inlined_call_operand.vmem [shape: f32[2,128,128], index: 0, kind: input, shape index: {}]   ;;  %s716_s1 = inlined_call_operand.vmem [shape: f32[2,4,128], index: 1, kind: input, shape index: {}]   ;;  %s717_s2 = inlined_call_operand.vmem [shape: s32[2,1,128], index: 2, kind: output, shape index: {0}]   ;;  %s718_s3 = inlined_call_operand.vmem [shape: f32[2,1,128], index: 3, kind: output, shape index: {1}]  }
   0x1 LB: > { %s510_s13 = sadd.s32 4294967295, %s624_s12   ;;  %p514_p0 = scmp.ge.s32.totalorder %s624_s12, 1  ;;  %s624_s12 = sphi %s649_s12, %s14_s12  }
   0x2   : > { %p149_p1 = scmp.lt.s32.totalorder %s624_s12, 3 }
   0x4   : > { %p150_p2 = pnand %p514_p0, %p149_p1 }
   0x5   : > { %p178_p3 = scmp.lt.s32.totalorder (!%p150_p2), %s510_s13, 1  ;;  %vm313_vm0 = vcmask (!%p150_p2), 1043456   ;;  %v626_v5 = vmov (!%p150_p2), 0.0|0.0   ;;  %vm627_vm1 = vmmov (!%p150_p2), 0   ;;  %v628_v20 = vmov (!%p150_p2), 0.0  }
   0x6   : > { %153 = sbr.rel (%p150_p2) target bundleno = 671 (0x29f), region = 28  ;;  %573 = vmatprep.subr.bf16.mxu0 (!%p150_p2), %v626_v5  ;;  %570 = vmatprep.mubr.msk.f32.mxu0 (!%p150_p2), %vm627_vm1, %v628_v20 }
   0xd   : > { %s720_s13 = smov (!%p178_p3, %s510_s13), 1 }
   0xe   : > { %s520_s14 = sshll.u32 %s720_s13, 7  ;;  %s517_s18 = sshll.u32 %s720_s13, 2 }
   0xf   : > { %s663_s17 = scalar_lea.vmem %s715_s0, %s520_s14  ;;  %s186_s21 = scalar_lea.vmem %s716_s1, %s517_s18 }
  0x10   : > { %v193_v0 = vld [vmem:[%s663_s17] sm:$0xff]  ;;  %v194_v1 = vld [vmem:[%s663_s17 + $0x8] sm:$0xff]  ;;  %v195_v3 = vld [vmem:[%s663_s17 + $0x10] sm:$0xff]  ;;  %s189_s24 = scalar_lea.vmem %s717_s2, %s720_s13  ;;  %s192_s27 = scalar_lea.vmem %s718_s3, %s720_s13 }
  0x11   : > { %210 = vxpose.xlu0.b32.start [1/16] %v193_v0, 128  ;;  %v671_v2 = vld [vmem:[%s186_s21] sm:$0xf]  ;;  %v196_v7 = vld [vmem:[%s663_s17 + $0x18] sm:$0xff]  ;;  %v198_v9 = vld [vmem:[%s663_s17 + $0x28] sm:$0xff] }
  0x12   : > { %v312_v4 = vmul.f32 %v671_v2, %v671_v2  ;;  %v197_v8 = vld [vmem:[%s663_s17 + $0x20] sm:$0xff]  ;;  %v199_v10 = vld [vmem:[%s663_s17 + $0x30] sm:$0xff]  ;;  %v200_v11 = vld [vmem:[%s663_s17 + $0x38] sm:$0xff] }
  0x13   : > { %v201_v12 = vld [vmem:[%s663_s17 + $0x40] sm:$0xff]  ;;  %v202_v13 = vld [vmem:[%s663_s17 + $0x48] sm:$0xff]  ;;  %v203_v14 = vld [vmem:[%s663_s17 + $0x50] sm:$0xff] }
  0x14   : > { %v314_v6 = vsel %vm313_vm0, %v312_v4, 0.0  ;;  %v204_v15 = vld [vmem:[%s663_s17 + $0x58] sm:$0xff]  ;;  %v205_v16 = vld [vmem:[%s663_s17 + $0x60] sm:$0xff]  ;;  %v206_v17 = vld [vmem:[%s663_s17 + $0x68] sm:$0xff] }
  0x15   : > { %211 = vxpose.xlu0.b32.cont [2/16] %v194_v1, 128  ;;  %315 = vadd.xlane.f32.xlu1 %v314_v6  ;;  %v207_v18 = vld [vmem:[%s663_s17 + $0x70] sm:$0xff]  ;;  %v208_v19 = vld [vmem:[%s663_s17 + $0x78] sm:$0xff] }
  0x19   : > { %212 = vxpose.xlu0.b32.cont [3/16] %v195_v3, 128 }
  0x1d   : > { %213 = vxpose.xlu0.b32.cont [4/16] %v196_v7, 128 }
  0x21   : > { %214 = vxpose.xlu0.b32.cont [5/16] %v197_v8, 128 }
  0x25   : > { %215 = vxpose.xlu0.b32.cont [6/16] %v198_v9, 128 }
  0x29   : > { %216 = vxpose.xlu0.b32.cont [7/16] %v199_v10, 128 }
  0x2d   : > { %217 = vxpose.xlu0.b32.cont [8/16] %v200_v11, 128 }
  0x31   : > { %218 = vxpose.xlu0.b32.cont [9/16] %v201_v12, 128 }
  0x35   : > { %219 = vxpose.xlu0.b32.cont [10/16] %v202_v13, 128 }
  0x39   : > { %220 = vxpose.xlu0.b32.cont [11/16] %v203_v14, 128 }
  0x3d   : > { %221 = vxpose.xlu0.b32.cont [12/16] %v204_v15, 128 }
  0x41   : > { %222 = vxpose.xlu0.b32.cont [13/16] %v205_v16, 128 }
  0x45   : > { %223 = vxpose.xlu0.b32.cont [14/16] %v206_v17, 128 }
  0x49   : > { %224 = vxpose.xlu0.b32.cont [15/16] %v207_v18, 128 }
  0x4d   : > { %225 = vxpose.xlu0.b32.end [16/16] %v208_v19, 128 }
  0x91   : > { %v226_v21 = vpop.trf.xlu0 }
  0x92   : > { %v317_v23 = vmul.f32 %v226_v21, %v226_v21 }
  0x95   : > { %v227_v22 = vpop.trf.xlu0 }
  0x96   : > { %v318_v24 = vmul.f32 %v227_v22, %v227_v22  ;;  %v574_v25 = vpack.c.bf16 %v227_v22, %v226_v21 }
  0x98   : > { %v333_v26 = vadd.f32 %v318_v24, %v317_v23  ;;  %575 = vmatpush3.bf16.msra.mxu0 %v574_v25 }
  0x99   : > { %v228_v27 = vpop.trf.xlu0  ;;  %576 = vmatprep.subr.bf16.mxu0 %v626_v5 }
  0x9a   : > { %v319_v28 = vmul.f32 %v228_v27, %v228_v27 }
  0x9c   : > { %v334_v29 = vadd.f32 %v333_v26, %v319_v28 }
  0x9d   : > { %v229_v30 = vpop.trf.xlu0 }
  0x9e   : > { %v577_v31 = vpack.c.bf16 %v229_v30, %v228_v27  ;;  %v320_v32 = vmul.f32 %v229_v30, %v229_v30 }
  0xa0   : > { %v335_v33 = vadd.f32 %v334_v29, %v320_v32  ;;  %578 = vmatpush3.bf16.msra.mxu0 %v577_v31 }
  0xa1   : > { %v230_v34 = vpop.trf.xlu0  ;;  %579 = vmatprep.subr.bf16.mxu0 %v626_v5 }
  0xa2   : > { %v321_v35 = vmul.f32 %v230_v34, %v230_v34  ;;  %v316_v20 = vpop.xlane.xlu1 %315 }
  0xa4   : > { %v336_v36 = vadd.f32 %v335_v33, %v321_v35  ;;  %v404_v35 = vlaneseq }
  0xa5   : > { %v231_v37 = vpop.trf.xlu0 }
  0xa6   : > { %v580_v38 = vpack.c.bf16 %v231_v37, %v230_v34  ;;  %v322_v39 = vmul.f32 %v231_v37, %v231_v37 }
  0xa8   : > { %v337_v40 = vadd.f32 %v336_v36, %v322_v39  ;;  %581 = vmatpush3.bf16.msra.mxu0 %v580_v38  ;;  %v405_v38 = vshrl.u32 %v404_v35, 7 }
  0xa9   : > { %v232_v41 = vpop.trf.xlu0  ;;  %582 = vmatprep.subr.bf16.mxu0 %v626_v5 }
  0xaa   : > { %v323_v42 = vmul.f32 %v232_v41, %v232_v41 }
  0xac   : > { %v338_v43 = vadd.f32 %v337_v40, %v323_v42 }
  0xad   : > { %v233_v44 = vpop.trf.xlu0 }
  0xae   : > { %v583_v45 = vpack.c.bf16 %v233_v44, %v232_v41  ;;  %v324_v46 = vmul.f32 %v233_v44, %v233_v44 }
  0xb0   : > { %v339_v47 = vadd.f32 %v338_v43, %v324_v46  ;;  %584 = vmatpush3.bf16.msra.mxu0 %v583_v45 }
  0xb1   : > { %v234_v48 = vpop.trf.xlu0  ;;  %585 = vmatprep.subr.bf16.mxu0 %v626_v5 }
  0xb2   : > { %v325_v49 = vmul.f32 %v234_v48, %v234_v48 }
  0xb4   : > { %v340_v50 = vadd.f32 %v339_v47, %v325_v49 }
  0xb5   : > { %v235_v51 = vpop.trf.xlu0 }
  0xb6   : > { %v586_v52 = vpack.c.bf16 %v235_v51, %v234_v48  ;;  %v326_v53 = vmul.f32 %v235_v51, %v235_v51 }
  0xb8   : > { %v341_v54 = vadd.f32 %v340_v50, %v326_v53  ;;  %587 = vmatpush3.bf16.msra.mxu0 %v586_v52 }
  0xb9   : > { %v236_v55 = vpop.trf.xlu0  ;;  %588 = vmatprep.subr.bf16.mxu0 %v626_v5 }
  0xba   : > { %v327_v56 = vmul.f32 %v236_v55, %v236_v55 }
  0xbc   : > { %v342_v57 = vadd.f32 %v341_v54, %v327_v56 }
  0xbd   : > { %v237_v58 = vpop.trf.xlu0 }
  0xbe   : > { %v589_v59 = vpack.c.bf16 %v237_v58, %v236_v55  ;;  %v328_v60 = vmul.f32 %v237_v58, %v237_v58 }
  0xc0   : > { %v343_v61 = vadd.f32 %v342_v57, %v328_v60  ;;  %590 = vmatpush3.bf16.msra.mxu0 %v589_v59 }
  0xc1   : > { %v238_v62 = vpop.trf.xlu0  ;;  %591 = vmatprep.subr.bf16.mxu0 %v626_v5 }
  0xc2   : > { %v329_v63 = vmul.f32 %v238_v62, %v238_v62 }
  0xc4   : > { %v344_v0 = vadd.f32 %v343_v61, %v329_v63 }
  0xc5   : > { %v239_v1 = vpop.trf.xlu0 }
  0xc6   : > { %v592_v3 = vpack.c.bf16 %v239_v1, %v238_v62  ;;  %v330_v4 = vmul.f32 %v239_v1, %v239_v1 }
  0xc8   : > { %v345_v6 = vadd.f32 %v344_v0, %v330_v4  ;;  %593 = vmatpush3.bf16.msra.mxu0 %v592_v3 }
  0xc9   : > { %v240_v7 = vpop.trf.xlu0  ;;  %594 = vmatprep.subr.bf16.mxu0 %v626_v5 }
  0xca   : > { %v331_v8 = vmul.f32 %v240_v7, %v240_v7 }
  0xcc   : > { %v346_v9 = vadd.f32 %v345_v6, %v331_v8 }
  0xcd   : > { %v241_v10 = vpop.trf.xlu0 }
  0xce   : > { %v595_v11 = vpack.c.bf16 %v241_v10, %v240_v7  ;;  %v332_v12 = vmul.f32 %v241_v10, %v241_v10 }
  0xd0   : > { %v347_v13 = vadd.f32 %v346_v9, %v332_v12  ;;  %596 = vmatpush3.bf16.msra.mxu0 %v595_v11 }
  0xd2   : > { %v348_v14 = vrot.slane %v347_v13, 4 }
  0xd3   : > { %571 = vmatmul.mubr.f32.vlgmr.msra.gmra.mrb[0].mxu0 %v671_v2 }
  0xd4   : > { %v349_v15 = vadd.f32 %v348_v14, %v347_v13 }
  0xd6   : > { %v350_v16 = vrot.slane %v349_v15, 2 }
  0xd8   : > { %v351_v17 = vadd.f32 %v350_v16, %v349_v15 }
  0xda   : > { %v352_v18 = vrot.slane %v351_v17, 1 }
  0xdc   : > { %v353_v19 = vadd.f32 %v352_v18, %v351_v17 }
  0xde   : > { %v354_v22 = vadd.f32 %v353_v19, %v316_v20 }
 0x1a6   : > { %v308_v21 = vpop.f32.mrb[0].mxu0 }
 0x1a7   : > { %v355_v23 = vmul.f32 2.0, %v308_v21  ;;  %v572_v5 = vpop.f32.mrb[1].mxu0 }
 0x1a9   : > { %v356_v24 = vsub.f32 %v354_v22, %v355_v23 }
 0x1ab   : > { %v357_v25 = vmax.f32 %v356_v24, 0.0 }
 0x1ad   : > { %608 = vrsqrt.f32 %v357_v25  ;;  %vm360_vm2 = vcmp.eq.f32.partialorder %v357_v25, inf  ;;  %v363_v28 = vand.u32 2147483648, %v357_v25  ;;  %vm362_vm3 = vcmp.eq.f32.partialorder %v357_v25, 0.0 }
 0x1b7   : > { %v609_v26 = vpop.eup %608 }
 0x1b8   : > { %v359_v27 = vmul.f32 %v609_v26, %v357_v25 }
 0x1ba   : > { %v361_v29 = vsel %vm360_vm2, %v357_v25, %v359_v27 }
 0x1bb   : > { %v364_v2 = vsel %vm362_vm3, %v363_v28, %v361_v29 }
 0x1bc   : > { %v365_v30 = vadd.f32 1.0, %v364_v2  ;;  %v406_v31 = vsel %vm313_vm0, %v364_v2, inf }
 0x1bd   : > { %v407_v32 = vrot.slane %v406_v31, 4 }
 0x1be   : > { %610 = vrcp.f32 %v365_v30 }
 0x1bf   : > { %v408_v33 = vmin.f32 %v406_v31, %v407_v32 }
 0x1c1   : > { %v409_v34 = vrot.slane %v408_v33, 2 }
 0x1c3   : > { %v410_v36 = vmin.f32 %v408_v33, %v409_v34 }
 0x1c5   : > { %v411_v37 = vrot.slane %v410_v36, 1 }
 0x1c7   : > { %v412_v39 = vmin.f32 %v410_v36, %v411_v37 }
 0x1c8   : > { %v611_v40 = vpop.eup %610 }
 0x1c9   : > { %vm413_vm4 = vcmp.le.f32.partialorder %v364_v2, %v412_v39  ;;  %v367_v41 = vsel %vm313_vm0, %v611_v40, 0.0  ;;  %v377_v51 = vmul.f32 %v611_v40, %v611_v40 }
 0x1ca   : > { %v414_v42 = vsel %vm413_vm4, %v405_v38, 4  ;;  %374 = vadd.xlane.f32.xlu1 %v367_v41  ;;  %v368_v56 = vrot.slane %v367_v41, 4 }
 0x1cb   : > { %v415_v43 = vsel %vm313_vm0, %v414_v42, 2147483647 }
 0x1cc   : > { %v416_v44 = vrot.slane %v415_v43, 4  ;;  %v369_v59 = vadd.f32 %v368_v56, %v367_v41 }
 0x1ce   : > { %vm417_vm5 = vcmp.lt.s32.totalorder %v415_v43, %v416_v44  ;;  %v370_v62 = vrot.slane %v369_v59, 2 }
 0x1cf   : > { %v418_v45 = vsel %vm417_vm5, %v415_v43, %v416_v44 }
 0x1d0   : > { %v419_v46 = vrot.slane %v418_v45, 2  ;;  %v371_v0 = vadd.f32 %v370_v62, %v369_v59 }
 0x1d2   : > { %vm420_vm6 = vcmp.lt.s32.totalorder %v418_v45, %v419_v46  ;;  %v372_v1 = vrot.slane %v371_v0, 1 }
 0x1d3   : > { %v421_v47 = vsel %vm420_vm6, %v418_v45, %v419_v46 }
 0x1d4   : > { %v422_v48 = vrot.slane %v421_v47, 1  ;;  %v373_v3 = vadd.f32 %v372_v1, %v371_v0 }
 0x1d6   : > { %vm423_vm7 = vcmp.lt.s32.totalorder %v421_v47, %v422_v48 }
 0x1d7   : > { %v424_v49 = vsel %vm423_vm7, %v421_v47, %v422_v48 }
 0x1d8   : > { %425 = vst [vmem:[%s189_s24] sm:$0x1] %v424_v49 }
 0x257   : > { %v375_v50 = vpop.xlane.xlu1 %374 }
 0x258   : > { %612 = vrcp.f32 %v375_v50 }
 0x262   : > { %v613_v52 = vpop.eup %612 }
 0x263   : > { %v378_v53 = vmul.f32 %v613_v52, %v377_v51  ;;  %v388_v6 = vmul.f32 %v613_v52, %v611_v40 }
 0x265   : > { %v379_v54 = vsel %vm313_vm0, %v378_v53, 0.0 }
 0x266   : > { %v380_v55 = vrot.slane %v379_v54, 4 }
 0x268   : > { %v381_v57 = vadd.f32 %v380_v55, %v379_v54 }
 0x26a   : > { %v382_v58 = vrot.slane %v381_v57, 2 }
 0x26c   : > { %v383_v60 = vadd.f32 %v382_v58, %v381_v57 }
 0x26e   : > { %v384_v61 = vrot.slane %v383_v60, 1 }
 0x270   : > { %v385_v63 = vadd.f32 %v384_v61, %v383_v60 }
 0x272   : > { %614 = vrcp.f32 %v385_v63 }
 0x27c   : > { %v615_v4 = vpop.eup %614 }
 0x27d   : > { %v389_v7 = vmul.f32 %v615_v4, %v373_v3  ;;  %v387_v10 = vmul.f32 %v615_v4, %v378_v53 }
 0x27f   : > { %v390_v8 = vmul.f32 %v389_v7, %v388_v6  ;;  %vm391_vm8 = vcmp.gt.f32.partialorder %v387_v10, 0.0 }
 0x281   : > { %616 = vlog2.f32 %v390_v8 }
 0x28b   : > { %v617_v9 = vpop.eup %616 }
 0x28c   : > { %v393_v11 = vmul.f32 0.6931472, %v617_v9 }
 0x28e   : > { %v394_v12 = vmul.f32 %v393_v11, %v387_v10 }
 0x290   : > { %v395_v13 = vsel %vm391_vm8, %v394_v12, 0.0 }
 0x291   : > { %v396_v14 = vsel %vm313_vm0, %v395_v13, 0.0 }
 0x292   : > { %v397_v15 = vrot.slane %v396_v14, 4 }
 0x294   : > { %v398_v16 = vadd.f32 %v397_v15, %v396_v14 }
 0x296   : > { %v399_v17 = vrot.slane %v398_v16, 2 }
 0x298   : > { %v400_v18 = vadd.f32 %v399_v17, %v398_v16 }
 0x29a   : > { %v401_v19 = vrot.slane %v400_v18, 1 }
 0x29c   : > { %v402_v20 = vadd.f32 %v401_v19, %v400_v18 }
 0x29e   : > { %403 = vst [vmem:[%s192_s27] sm:$0x1] %v402_v20 }
 0x29f PF: > { %s14_s12 = sadd.s32 1, %s624_s12  }
 0x2a0   : > { %p11_p4 = scmp.ge.s32.totalorder %s14_s12, 4  }
 0x2a2   :  { %13 = sbr.rel (!%p11_p4) target bundleno = 1 (0x1), region = 73 }

</bundles_post_ra>
